<compile_context>
chip_gen: v7x
topology: tpu7x:2x2x1
jax: 0.10.0
libtpu: 0.0.40
codegen_flags: <defaults>
</compile_context>

<pallas_src>
import functools

import jax
import jax.numpy as jnp
from jax import lax
from jax.experimental import pallas as pl
from jax.experimental.pallas import tpu as pltpu


def _round_up(x, m):
    return ((x + m - 1) // m) * m


def _fused_pool_cls_kernel(ids_ref, emb_ref, w_ref, b_ref, out_ref, acc_ref,
                           *, tb, sp, tv):
    # ids_ref : [TB, Sp, 1]  int32   token ids (0 == padding)
    # emb_ref : [TV, H]      bf16    vocab tile of the embedding table
    # w_ref   : [H, Lp]      bf16    classifier weight, pre-transposed
    # b_ref   : [1, Lp]      f32     classifier bias, lane-padded
    # out_ref : [TB, Lp]     f32     logits tile (resident across vocab axis)
    # acc_ref : [TB, H]      f32     masked-sum accumulator (VMEM scratch)
    vi = pl.program_id(1)
    n_v = pl.num_programs(1)

    @pl.when(vi == 0)
    def _():
        acc_ref[...] = jnp.zeros_like(acc_ref)

    ids = ids_ref[...]                                             # [TB,Sp,1]
    valid = ids != 0                                               # [TB,Sp,1]

    # One-hot membership of each (row, position) token in this vocab tile.
    # Pure VPU compares; the heavy reduction + pooling go to the MXU below.
    vocab = vi * tv + lax.broadcasted_iota(jnp.int32, (tb, sp, tv), 2)
    onehot = ((ids == vocab) & valid).astype(jnp.float32)          # [TB,Sp,TV]
    counts = jnp.sum(onehot, axis=1)                               # [TB,TV]

    # Masked sum of token embeddings for this vocab tile (MXU, bf16 -> f32).
    # counts are small integers (<= S), exact in bf16 for S <= 256.
    acc_ref[...] += jnp.dot(counts.astype(jnp.bfloat16), emb_ref[...],
                            preferred_element_type=jnp.float32)    # [TB,H]

    @pl.when(vi == n_v - 1)
    def _():
        # Mean pooling with an exact divide (once per batch tile); clamp so
        # all-padding (batch-pad) rows don't divide by zero.
        lengths = jnp.sum(valid.astype(jnp.float32), axis=1)       # [TB,1]
        sent = acc_ref[...] / jnp.maximum(lengths, 1.0)            # [TB,H]
        # Classifier: [TB,H] @ [H,Lp] + [1,Lp]; lane-dense store.
        out_ref[...] = (
            jnp.dot(sent.astype(jnp.bfloat16), w_ref[...],
                    preferred_element_type=jnp.float32)
            + b_ref[...]
        )


def my_model_forward(input_ids, emb_table, cls_w, cls_b):
    """Forward pass of MyModel.

    input_ids : [B, S] int32  (0 == padding)
    emb_table : [V, H] float32  -- synthetic stand-in for bge_model
    cls_w     : [L, H] float32  -- torch.nn.Linear(hidden, labels).weight
    cls_b     : [L]    float32  -- torch.nn.Linear(hidden, labels).bias
    returns   : [B, L] float32 logits
    """
    B, S = input_ids.shape
    V, H = emb_table.shape
    L = cls_w.shape[0]

    # --- Tile selection --------------------------------------------------
    # Batch tile: up to 128 rows (review: TB=64-128 for large B); f32 sublane
    # multiple of 8.  For the small test batch this rounds to 8.
    TB = min(128, _round_up(B, 8))
    Bp = _round_up(B, TB)
    Sp = _round_up(S, 8)
    # Vocab reduction tile: lane-multiple, capped so the in-kernel one-hot
    # [TB, Sp, TV] f32 intermediate stays <= ~4 MiB of VMEM.
    TV = min(512, _round_up(V, 128))
    while TV > 128 and TB * Sp * TV * 4 > (4 << 20):
        TV //= 2
    Vp = _round_up(V, TV)
    Lp = _round_up(L, 128)

    # --- Operand preparation (all small; no [B,S,H] tensor in HBM) -------
    ids_p = jnp.pad(input_ids.astype(jnp.int32), ((0, Bp - B), (0, Sp - S)))
    ids_p = ids_p[:, :, None]                                     # [Bp,Sp,1]
    emb_p = jnp.pad(emb_table, ((0, Vp - V), (0, 0))).astype(jnp.bfloat16)
    w_t = jnp.pad(cls_w.T, ((0, 0), (0, Lp - L))).astype(jnp.bfloat16)
    b_p = jnp.pad(cls_b, (0, Lp - L)).reshape(1, Lp).astype(jnp.float32)

    grid = (Bp // TB, Vp // TV)
    kernel = functools.partial(_fused_pool_cls_kernel, tb=TB, sp=Sp, tv=TV)

    # Generation-aware VMEM budget: ~48 MiB on v7x (64 MiB physical),
    # ~96-100 MiB on v5e/v6e (128 MiB physical).
    try:
        vmem_cap = pltpu.get_tpu_info().vmem_capacity_bytes
    except Exception:
        vmem_cap = 64 * 1024 * 1024
    vmem_limit = int(max(32 * 1024 * 1024,
                         min(0.75 * vmem_cap, 100 * 1024 * 1024)))

    out_p = pl.pallas_call(
        kernel,
        out_shape=jax.ShapeDtypeStruct((Bp, Lp), jnp.float32),
        grid_spec=pltpu.PrefetchScalarGridSpec(
            num_scalar_prefetch=0,
            grid=grid,
            in_specs=[
                pl.BlockSpec((TB, Sp, 1), lambda bi, vi: (bi, 0, 0)),  # ids
                pl.BlockSpec((TV, H), lambda bi, vi: (vi, 0)),         # emb tile
                pl.BlockSpec((H, Lp), lambda bi, vi: (0, 0)),          # weight^T
                pl.BlockSpec((1, Lp), lambda bi, vi: (0, 0)),          # bias
            ],
            out_specs=pl.BlockSpec((TB, Lp), lambda bi, vi: (bi, 0)),
            scratch_shapes=[pltpu.VMEM((TB, H), jnp.float32)],
        ),
        compiler_params=pltpu.CompilerParams(
            dimension_semantics=("parallel", "arbitrary"),
            vmem_limit_bytes=vmem_limit,
        ),
    )(ids_p, emb_p, w_t, b_p)

    return out_p[:B, :L]


def reference_forward(input_ids, emb_table, cls_w, cls_b):
    hidden = jnp.take(emb_table, input_ids, axis=0)
    mask = (input_ids != 0).astype(jnp.float32)[..., None]
    summed = jnp.sum(hidden * mask, axis=1)
    lengths = jnp.sum(mask, axis=1)
    sent = summed / lengths
    return sent @ cls_w.T + cls_b


if __name__ == "__main__":
    # Small shapes consistent with the module's forward.
    B, S, H, L, V = 2, 8, 32, 5, 64

    key = jax.random.PRNGKey(0)
    k_emb, k_w, k_b, k_ids = jax.random.split(key, 4)

    emb_table = jax.random.normal(k_emb, (V, H), dtype=jnp.float32) * 0.02
    cls_w = jax.random.normal(k_w, (L, H), dtype=jnp.float32) * 0.02
    cls_b = jax.random.normal(k_b, (L,), dtype=jnp.float32) * 0.01

    # Token ids in [1, V); zero out a tail of each sequence as padding.
    input_ids = jax.random.randint(k_ids, (B, S), 1, V, dtype=jnp.int32)
    pad_mask = jnp.arange(S)[None, :] < jnp.array([[5], [7]])  # valid lengths 5, 7
    input_ids = jnp.where(pad_mask, input_ids, 0)

    logits = my_model_forward(input_ids, emb_table, cls_w, cls_b)
    jax.block_until_ready(logits)

    ref = reference_forward(input_ids, emb_table, cls_w, cls_b)
    assert logits.shape == (B, L)
    # bf16 embedding table / classifier weights => slightly relaxed tolerance.
    assert jnp.allclose(logits, ref, atol=1e-3, rtol=2e-2), (
        float(jnp.max(jnp.abs(logits - ref)))
    )

    print("KERNEL_OK")
</pallas_src>

<mosaic_0001>
module attributes {stable_mosaic.version = 11 : i64} {
  func.func @_fused_pool_cls_kernel(%arg0: i32, %arg1: i32, %arg2: memref<8x8x1xi32, #tpu.memory_space<vmem>>, %arg3: memref<128x32xbf16, #tpu.memory_space<vmem>>, %arg4: memref<32x128xbf16, #tpu.memory_space<vmem>>, %arg5: memref<1x128xf32, #tpu.memory_space<vmem>>, %arg6: memref<8x128xf32, #tpu.memory_space<vmem>>, %arg7: memref<8x32xf32, #tpu.memory_space<vmem>>) attributes {dimension_semantics = [#tpu.dimension_semantics<parallel>, #tpu.dimension_semantics<arbitrary>], iteration_bounds = array<i64: 1, 1>, scalar_prefetch = 0 : i64, scratch_operands = 1 : i64, tpu.core_type = #tpu.core_type<tc>, window_params = [{transform_indices = @transform_0, window_bounds = array<i64: 8, 8, 1>}, {transform_indices = @transform_1, window_bounds = array<i64: 128, 32>}, {pipeline_mode = #tpu.pipeline_mode<synchronous>, transform_indices = @transform_2, window_bounds = array<i64: 32, 128>}, {pipeline_mode = #tpu.pipeline_mode<synchronous>, transform_indices = @transform_3, window_bounds = array<i64: 1, 128>}, {transform_indices = @transform_4, window_bounds = array<i64: 8, 128>}]} {
    %c0_i32 = arith.constant 0 : i32
    %0 = arith.cmpi eq, %arg1, %c0_i32 : i32
    %1 = arith.extui %0 : i1 to i32
    %c0_i32_0 = arith.constant 0 : i32
    %2 = arith.cmpi ne, %1, %c0_i32_0 : i32
    scf.if %2 {
      %cst_13 = arith.constant 0.000000e+00 : f32
      %26 = vector.broadcast %cst_13 : f32 to vector<8x32xf32>
      %c0_14 = arith.constant 0 : index
      %c0_15 = arith.constant 0 : index
      %27 = vector.load %arg7[%c0_14, %c0_15] : memref<8x32xf32, #tpu.memory_space<vmem>>, vector<8x32xf32>
      tpu.vector_store %arg7[%c0_14, %c0_15], %26 {strides = array<i32>} : memref<8x32xf32, #tpu.memory_space<vmem>>, vector<8x32xf32>,
    } else {
    }
    %c0 = arith.constant 0 : index
    %c0_1 = arith.constant 0 : index
    %c0_2 = arith.constant 0 : index
    %3 = vector.load %arg2[%c0, %c0_1, %c0_2] : memref<8x8x1xi32, #tpu.memory_space<vmem>>, vector<8x8x1xi32>
    %c0_i32_3 = arith.constant 0 : i32
    %4 = vector.broadcast %c0_i32_3 : i32 to vector<8x8x1xi32>
    %5 = arith.cmpi ne, %3, %4 : vector<8x8x1xi32>
    %c128_i32 = arith.constant 128 : i32
    %6 = arith.muli %arg1, %c128_i32 : i32
    %7 = tpu.iota {dimensions = array<i32: 2>} : vector<8x8x128xi32>
    %8 = vector.broadcast %6 : i32 to vector<8x8x128xi32>
    %9 = arith.addi %8, %7 : vector<8x8x128xi32>
    %10 = vector.broadcast %3 : vector<8x8x1xi32> to vector<8x8x128xi32>
    %11 = arith.cmpi eq, %10, %9 : vector<8x8x128xi32>
    %12 = vector.broadcast %5 : vector<8x8x1xi1> to vector<8x8x128xi1>
    %13 = arith.andi %11, %12 : vector<8x8x128xi1>
    %14 = arith.extui %13 : vector<8x8x128xi1> to vector<8x8x128xi32>
    %15 = arith.sitofp %14 : vector<8x8x128xi32> to vector<8x8x128xf32>
    %cst = arith.constant dense<0.000000e+00> : vector<8x128xf32>
    %16 = vector.multi_reduction <add>, %15, %cst [1] : vector<8x8x128xf32> to vector<8x128xf32>
    %c0_4 = arith.constant 0 : index
    %c0_5 = arith.constant 0 : index
    %17 = vector.load %arg7[%c0_4, %c0_5] : memref<8x32xf32, #tpu.memory_space<vmem>>, vector<8x32xf32>
    %18 = arith.truncf %16 : vector<8x128xf32> to vector<8x128xbf16>
    %c0_6 = arith.constant 0 : index
    %c0_7 = arith.constant 0 : index
    %19 = vector.load %arg3[%c0_6, %c0_7] : memref<128x32xbf16, #tpu.memory_space<vmem>>, vector<128x32xbf16>
    %cst_8 = arith.constant dense<0.000000e+00> : vector<8x32xf32>
    %20 = tpu.matmul %18, %19, %cst_8 {dimension_numbers = #tpu.dot_dimension_numbers<[1], [0], [0], [1], [0, 0, 1, 1], [], []>} : vector<8x128xbf16>, vector<128x32xbf16>, vector<8x32xf32> -> vector<8x32xf32>
    %21 = arith.addf %17, %20 : vector<8x32xf32>
    %c0_9 = arith.constant 0 : index
    %c0_10 = arith.constant 0 : index
    %22 = vector.load %arg7[%c0_9, %c0_10] : memref<8x32xf32, #tpu.memory_space<vmem>>, vector<8x32xf32>
    tpu.vector_store %arg7[%c0_9, %c0_10], %21 {strides = array<i32>} : memref<8x32xf32, #tpu.memory_space<vmem>>, vector<8x32xf32>,
    %c0_i32_11 = arith.constant 0 : i32
    %23 = arith.cmpi eq, %arg1, %c0_i32_11 : i32
    %24 = arith.extui %23 : i1 to i32
    %c0_i32_12 = arith.constant 0 : i32
    %25 = arith.cmpi ne, %24, %c0_i32_12 : i32
    scf.if %25 {
      %26 = arith.extui %5 : vector<8x8x1xi1> to vector<8x8x1xi32>
      %27 = arith.sitofp %26 : vector<8x8x1xi32> to vector<8x8x1xf32>
      %cst_13 = arith.constant dense<0.000000e+00> : vector<8x1xf32>
      %28 = vector.multi_reduction <add>, %27, %cst_13 [1] : vector<8x8x1xf32> to vector<8x1xf32>
      %c0_14 = arith.constant 0 : index
      %c0_15 = arith.constant 0 : index
      %29 = vector.load %arg7[%c0_14, %c0_15] : memref<8x32xf32, #tpu.memory_space<vmem>>, vector<8x32xf32>
      %cst_16 = arith.constant 1.000000e+00 : f32
      %30 = vector.broadcast %cst_16 : f32 to vector<8x1xf32>
      %31 = arith.maximumf %28, %30 : vector<8x1xf32>
      %32 = vector.broadcast %31 : vector<8x1xf32> to vector<8x32xf32>
      %33 = arith.divf %29, %32 : vector<8x32xf32>
      %34 = arith.truncf %33 : vector<8x32xf32> to vector<8x32xbf16>
      %c0_17 = arith.constant 0 : index
      %c0_18 = arith.constant 0 : index
      %35 = vector.load %arg4[%c0_17, %c0_18] : memref<32x128xbf16, #tpu.memory_space<vmem>>, vector<32x128xbf16>
      %cst_19 = arith.constant dense<0.000000e+00> : vector<8x128xf32>
      %36 = tpu.matmul %34, %35, %cst_19 {dimension_numbers = #tpu.dot_dimension_numbers<[1], [0], [0], [1], [0, 0, 1, 1], [], []>} : vector<8x32xbf16>, vector<32x128xbf16>, vector<8x128xf32> -> vector<8x128xf32>
      %c0_20 = arith.constant 0 : index
      %c0_21 = arith.constant 0 : index
      %37 = vector.load %arg5[%c0_20, %c0_21] : memref<1x128xf32, #tpu.memory_space<vmem>>, vector<1x128xf32>
      %38 = vector.broadcast %37 : vector<1x128xf32> to vector<8x128xf32>
      %39 = arith.addf %36, %38 : vector<8x128xf32>
      %c0_22 = arith.constant 0 : index
      %c0_23 = arith.constant 0 : index
      %40 = vector.load %arg6[%c0_22, %c0_23] : memref<8x128xf32, #tpu.memory_space<vmem>>, vector<8x128xf32>
      tpu.vector_store %arg6[%c0_22, %c0_23], %39 {strides = array<i32>} : memref<8x128xf32, #tpu.memory_space<vmem>>, vector<8x128xf32>,
    } else {
    }
    return
  }
  func.func @transform_0(%arg0: i32, %arg1: i32) -> (i32, i32, i32) {
    %c0_i32 = arith.constant 0 : i32
    %c0_i32_0 = arith.constant 0 : i32
    %c0_i32_1 = arith.constant 0 : i32
    return %arg0, %c0_i32, %c0_i32_0 : i32, i32, i32
  }
  func.func @transform_1(%arg0: i32, %arg1: i32) -> (i32, i32) {
    %c0_i32 = arith.constant 0 : i32
    %c0_i32_0 = arith.constant 0 : i32
    return %arg1, %c0_i32 : i32, i32
  }
  func.func @transform_2(%arg0: i32, %arg1: i32) -> (i32, i32) {
    %c0_i32 = arith.constant 0 : i32
    %c0_i32_0 = arith.constant 0 : i32
    %c0_i32_1 = arith.constant 0 : i32
    return %c0_i32, %c0_i32_0 : i32, i32
  }
  func.func @transform_3(%arg0: i32, %arg1: i32) -> (i32, i32) {
    %c0_i32 = arith.constant 0 : i32
    %c0_i32_0 = arith.constant 0 : i32
    %c0_i32_1 = arith.constant 0 : i32
    return %c0_i32, %c0_i32_0 : i32, i32
  }
  func.func @transform_4(%arg0: i32, %arg1: i32) -> (i32, i32) {
    %c0_i32 = arith.constant 0 : i32
    %c0_i32_0 = arith.constant 0 : i32
    return %arg0, %c0_i32 : i32, i32
  }
}

</mosaic_0001>

<bundles_post_ra>
// kernel: tpu_custom_call.1
= control target key start
LH: loop header
LB: loop body
LE: loop exit
PB: predicated region body
PF: predicated region fallthrough
CT: control target
= control target key end

     0   :  { %vm349_vm0 = vcmask 7168   ;;  %v649_v3 = vmov 0   ;;  %v650_v6 = vmov 0.0   ;;  %s837_s0 = inlined_call_operand.vmem [shape: s32[8,8,1], index: 0, kind: input, shape index: {}]   ;;  %s838_s1 = inlined_call_operand.vmem [shape: bf16[128,32], index: 1, kind: input, shape index: {}]   ;;  %s839_s2 = inlined_call_operand.vmem [shape: bf16[32,128], index: 2, kind: input, shape index: {}]   ;;  %s840_s3 = inlined_call_operand.vmem [shape: f32[1,128], index: 3, kind: input, shape index: {}]   ;;  %s841_s4 = inlined_call_operand.hbm [shape: f32[8,128], index: 4, kind: output, shape index: {}]  }
   0x1   :  { %v25_v0 = vld [vmem:[%s837_s0] sm:$0xff]  ;;  %v26_v1 = vld [vmem:[%s837_s0 + $0x8] sm:$0xff]  ;;  %v27_v2 = vld [vmem:[%s837_s0 + $0x10] sm:$0xff]  ;;  %611 = vset.pattern.permute.xlu0 %v649_v3  ;;  %612 = vset.pattern.permute.xlu1 %v649_v3 }
   0x2   :  { %vm33_vm1 = vcmp.ne.s32.totalorder %v25_v0, 0  ;;  %vm34_vm2 = vcmp.ne.s32.totalorder %v26_v1, 0  ;;  %v28_v4 = vld [vmem:[%s837_s0 + $0x18] sm:$0xff]  ;;  %47 = vperm.xlu0 %611, %v25_v0   ;;  %579 = vmatprep.subr.bf16.mxu0 %v650_v6  ;;  %vm35_vm3 = vcmp.ne.s32.totalorder %v27_v2, 0  ;;  %v29_v13 = vld [vmem:[%s837_s0 + $0x20] sm:$0xff]  ;;  %v30_v16 = vld [vmem:[%s837_s0 + $0x28] sm:$0xff] }
   0x3   :  { %v78_v5 = vsel %vm33_vm1, 1, %v649_v3  ;;  %v555_v7 = vsel %vm33_vm1, 1.0, %v650_v6  ;;  %v556_v8 = vsel %vm34_vm2, 1.0, %v650_v6  ;;  %599 = vmatprep.subr.bf16.mxu1 %v650_v6  ;;  %v79_v11 = vsel %vm34_vm2, 1, %v649_v3  ;;  %v31_v19 = vld [vmem:[%s837_s0 + $0x30] sm:$0xff]  ;;  %v717_v20 = vld [vmem:[%s837_s0 + $0x38] sm:$0xff] }
   0x4   :  { %87 = vperm.xlu1 %612, %v78_v5   ;;  %v350_v9 = vsel %vm349_vm0, %v555_v7, 0.0  ;;  %v357_v10 = vsel %vm349_vm0, %v556_v8, 0.0  ;;  %v557_v12 = vsel %vm35_vm3, 1.0, %v650_v6  ;;  %vm36_vm4 = vcmp.ne.s32.totalorder %v28_v4, 0 }
   0x5   :  { %v351_v14 = vrot.slane %v350_v9, 4  ;;  %v558_v15 = vsel %vm36_vm4, 1.0, %v650_v6  ;;  %v358_v17 = vrot.slane %v357_v10, 4  ;;  %v364_v18 = vsel %vm349_vm0, %v557_v12, 0.0 }
   0x6   :  { %50 = vperm.xlu0 %611, %v26_v1   ;;  %vm37_vm5 = vcmp.ne.s32.totalorder %v29_v13, 0  ;;  %v80_v21 = vsel %vm35_vm3, 1, %v649_v3  ;;  %v371_v22 = vsel %vm349_vm0, %v558_v15, 0.0  ;;  %vm38_vm6 = vcmp.ne.s32.totalorder %v30_v16, 0 }
   0x7   :  { %v559_v23 = vsel %vm37_vm5, 1.0, %v650_v6  ;;  %v352_v24 = vadd.f32 %v351_v14, %v350_v9  ;;  %v560_v25 = vsel %vm38_vm6, 1.0, %v650_v6  ;;  %v359_v26 = vadd.f32 %v358_v17, %v357_v10 }
   0x8   :  { %90 = vperm.xlu1 %612, %v79_v11   ;;  %v365_v27 = vrot.slane %v364_v18, 4  ;;  %vm40_vm7 = vcmp.ne.s32.totalorder %v717_v20, 0  ;;  %v372_v28 = vrot.slane %v371_v22, 4  ;;  %v378_v29 = vsel %vm349_vm0, %v559_v23, 0.0 }
   0x9   :  { %vm39_vm8 = vcmp.ne.s32.totalorder %v31_v19, 0  ;;  %v81_v30 = vsel %vm36_vm4, 1, %v649_v3  ;;  %v385_v31 = vsel %vm349_vm0, %v560_v25, 0.0  ;;  %v353_v33 = vrot.slane %v352_v24, 2 }
   0xa   :  { %53 = vperm.xlu0 %611, %v27_v2   ;;  %v561_v32 = vsel %vm39_vm8, 1.0, %v650_v6  ;;  %v562_v34 = vsel %vm40_vm7, 1.0, %v650_v6  ;;  %v360_v35 = vrot.slane %v359_v26, 2  ;;  %v366_v36 = vadd.f32 %v365_v27, %v364_v18 }
   0xb   :  { %v379_v37 = vrot.slane %v378_v29, 4  ;;  %v373_v38 = vadd.f32 %v372_v28, %v371_v22  ;;  %v386_v39 = vrot.slane %v385_v31, 4  ;;  %v392_v40 = vsel %vm349_vm0, %v561_v32, 0.0 }
   0xc   :  { %93 = vperm.xlu1 %612, %v80_v21   ;;  %v82_v41 = vsel %vm37_vm5, 1, %v649_v3  ;;  %v399_v42 = vsel %vm349_vm0, %v562_v34, 0.0  ;;  %v367_v43 = vrot.slane %v366_v36, 2  ;;  %v393_v45 = vrot.slane %v392_v40, 4 }
   0xd   :  { %v380_v44 = vadd.f32 %v379_v37, %v378_v29  ;;  %v354_v46 = vadd.f32 %v353_v33, %v352_v24  ;;  %v374_v47 = vrot.slane %v373_v38, 2  ;;  %v387_v48 = vadd.f32 %v386_v39, %v385_v31 }
   0xe   :  { %56 = vperm.xlu0 %611, %v28_v4   ;;  %v400_v49 = vrot.slane %v399_v42, 4  ;;  %v361_v50 = vadd.f32 %v360_v35, %v359_v26 }
  0x10   :  { %96 = vperm.xlu1 %612, %v81_v30  }
  0x12   :  { %59 = vperm.xlu0 %611, %v29_v13  }
  0x14   :  { %99 = vperm.xlu1 %612, %v82_v41  }
  0x15   :  { %9 = vsyncpa [#allocation4], 0  ;;  %v83_v51 = vsel %vm38_vm6, 1, %v649_v3  ;;  %v613_v52 = vld [vmem:[%s838_s1] sm:$0xff]   ;;  %v381_v53 = vrot.slane %v380_v44, 2  ;;  %v394_v54 = vadd.f32 %v393_v45, %v392_v40  ;;  %v355_v55 = vrot.slane %v354_v46, 1 }
  0x16   :  { %62 = vperm.xlu0 %611, %v30_v16   ;;  %v368_v56 = vadd.f32 %v367_v43, %v366_v36  ;;  %v388_v57 = vrot.slane %v387_v48, 2  ;;  %v401_v58 = vadd.f32 %v400_v49, %v399_v42  ;;  %v362_v59 = vrot.slane %v361_v50, 1  ;;  %580 = vmatpush3.bf16.msra.mxu0 %v613_v52  ;;  %v614_v62 = vld [vmem:[%s838_s1 + $0x8] sm:$0xff]   ;;  %v615_v10 = vld [vmem:[%s838_s1 + $0x10] sm:$0xff]   ;;  %v617_v25 = vld [vmem:[%s838_s1 + $0x20] sm:$0xff]   ;;  %s652_s24 = smov [#allocation3]  }
  0x17   :  { %v375_v60 = vadd.f32 %v374_v47, %v373_v38  ;;  %v84_v61 = vsel %vm39_vm8, 1, %v649_v3  ;;  %581 = vmatprep.subr.bf16.mxu0 %v650_v6  ;;  %v395_v63 = vrot.slane %v394_v54, 2  ;;  %v356_v0 = vadd.f32 %v355_v55, %v354_v46  ;;  %v618_v30 = vld [vmem:[%s838_s1 + $0x28] sm:$0xff]   ;;  %v619_v33 = vld [vmem:[%s838_s1 + $0x30] sm:$0xff]   ;;  %v620_v34 = vld [vmem:[%s838_s1 + $0x38] sm:$0xff]   ;;  %s531_s25 = sshll.u32 %s652_s24, 4  ;;  %s532_s25 = int_to_ptr.vmem [resolvable:$true] %s531_s25 }
  0x18   :  { %102 = vperm.xlu1 %612, %v83_v51   ;;  %v369_v1 = vrot.slane %v368_v56, 1  ;;  %v382_v2 = vadd.f32 %v381_v53, %v380_v44  ;;  %v402_v4 = vrot.slane %v401_v58, 2  ;;  %v363_v5 = vadd.f32 %v362_v59, %v361_v50  ;;  %s625_s26 = scalar_lea.vmem %s532_s25, 128  ;;  %p630_p1 = scmp.lt.s32.totalorder %s532_s25, %s532_s25 }
  0x19   :  { %v376_v7 = vrot.slane %v375_v60, 1  ;;  %v389_v8 = vadd.f32 %v388_v57, %v387_v48  ;;  %v85_v9 = vsel %vm40_vm7, 1, %v649_v3  ;;  %v407_v11 = vmax.f32 %v356_v0, 1.0  ;;  %v616_v3 = vld [vmem:[%s838_s1 + $0x18] sm:$0xff]   ;;  %p626_p0 = scmp.ne.s32.totalorder %s532_s25, %s625_s26  ;;  %p631_p2 = scmp.lt.s32.totalorder %s625_s26, %s625_s26 }
  0x1a   :  { %65 = vperm.xlu0 %611, %v31_v19   ;;  %582 = vmatpush3.bf16.msra.mxu0 %v614_v62  ;;  %v370_v12 = vadd.f32 %v369_v1, %v368_v56  ;;  %v383_v13 = vrot.slane %v382_v2, 1  ;;  %v396_v14 = vadd.f32 %v395_v63, %v394_v54  ;;  %v408_v15 = vmax.f32 %v363_v5, 1.0 }
  0x1b   :  { %583 = vmatprep.subr.bf16.mxu0 %v650_v6  ;;  %v377_v16 = vadd.f32 %v376_v7, %v375_v60  ;;  %v390_v17 = vrot.slane %v389_v8, 1  ;;  %v403_v18 = vadd.f32 %v402_v4, %v401_v58  ;;  %vm651_vm9 = vmmov 0   ;;  %p632_p3 = por %p631_p2, %p630_p1 }
  0x1c   :  { %105 = vperm.xlu1 %612, %v84_v61   ;;  %v409_v19 = vmax.f32 %v370_v12, 1.0  ;;  %v384_v21 = vadd.f32 %v383_v13, %v382_v2  ;;  %595 = vmatprep.mubr.msk.bf16.mxu0 %vm651_vm9, %v650_v6  ;;  %vm23_vm10 = vcmask 261120   ;;  %v42_v35 = vlaneseq }
  0x1d   :  { %v410_v22 = vmax.f32 %v377_v16, 1.0  ;;  %v391_v23 = vadd.f32 %v390_v17, %v389_v8  ;;  %v404_v24 = vrot.slane %v403_v18, 1  ;;  %603 = vmatprep.mubr.msk.bf16.mxu1 %vm651_vm9, %v650_v6  ;;  %24 = vst.msk [vmem:[#allocation2] sm:$0xff] %vm23_vm10, %v650_v6  ;;  %p633_p4 = pnand %p632_p3, %p626_p0 }
  0x1e   :  { %68 = vperm.xlu0 %611, %v717_v20   ;;  %584 = vmatpush3.bf16.msra.mxu0 %v615_v10  ;;  %v397_v20 = vrot.slane %v396_v14, 1  ;;  %v411_v26 = vmax.f32 %v384_v21, 1.0  ;;  %v783_v36 = vand.u32 127, %v42_v35 }
  0x1f   :  { %585 = vmatprep.subr.bf16.mxu0 %v650_v6  ;;  %v412_v28 = vmax.f32 %v391_v23, 1.0  ;;  %v405_v29 = vadd.f32 %v404_v24, %v403_v18 }
  0x20   :  { %108 = vperm.xlu1 %612, %v85_v9   ;;  %v398_v27 = vadd.f32 %v397_v20, %v396_v14 }
  0x21   :  { %v414_v32 = vmax.f32 %v405_v29, 1.0 }
  0x22   :  { %417 = vperm.xlu0 %611, %v407_v11   ;;  %586 = vmatpush3.bf16.msra.mxu0 %v616_v3  ;;  %v413_v31 = vmax.f32 %v398_v27, 1.0 }
  0x23   :  { %587 = vmatprep.subr.bf16.mxu0 %v650_v6 }
  0x24   :  { %421 = vperm.xlu1 %612, %v408_v15  }
  0x26   :  { %425 = vperm.xlu0 %611, %v409_v19   ;;  %588 = vmatpush3.bf16.msra.mxu0 %v617_v25 }
  0x27   :  { %589 = vmatprep.subr.bf16.mxu0 %v650_v6 }
  0x28   :  { %429 = vperm.xlu1 %612, %v410_v22  }
  0x2a   :  { %433 = vperm.xlu0 %611, %v411_v26   ;;  %590 = vmatpush3.bf16.msra.mxu0 %v618_v30 }
  0x2b   :  { %591 = vmatprep.subr.bf16.mxu0 %v650_v6 }
  0x2c   :  { %437 = vperm.xlu1 %612, %v412_v28  }
  0x2e   :  { %441 = vperm.xlu0 %611, %v413_v31   ;;  %592 = vmatpush3.bf16.msra.mxu0 %v619_v33 }
  0x2f   :  { %593 = vmatprep.subr.bf16.mxu0 %v650_v6 }
  0x30   :  { %445 = vperm.xlu1 %612, %v414_v32  }
  0x32   :  { %594 = vmatpush3.bf16.msra.mxu0 %v620_v34 }
  0x81   :  { %v48_v37 = vpop.permute.xlu0 %47 }
  0x82   :  { %vm70_vm11 = vcmp.eq.s32.totalorder %v48_v37, %v783_v36 }
  0x83   :  { %v88_v38 = vpop.permute.xlu1 %87 }
  0x84   :  { %vm110_vm12 = vcmp.eq.s32.totalorder %v88_v38, 1 }
  0x85   :  { %v51_v39 = vpop.permute.xlu0 %50  ;;  %vm118_vm14 = vmand %vm70_vm11, %vm110_vm12 }
  0x86   :  { %vm71_vm13 = vcmp.eq.s32.totalorder %v51_v39, %v783_v36  ;;  %v539_v43 = vsel %vm118_vm14, 1.0, %v650_v6 }
  0x87   :  { %v91_v40 = vpop.permute.xlu1 %90  ;;  %v142_v46 = vrot.slane %v539_v43, 4 }
  0x88   :  { %vm111_vm15 = vcmp.eq.s32.totalorder %v91_v40, 1 }
  0x89   :  { %vm119_vm0 = vmand %vm71_vm13, %vm111_vm15  ;;  %v54_v42 = vpop.permute.xlu0 %53  ;;  %v143_v52 = vadd.f32 %v539_v43, %v142_v46 }
  0x8a   :  { %v540_v41 = vsel %vm119_vm0, 1.0, %v650_v6  ;;  %vm72_vm1 = vcmp.eq.s32.totalorder %v54_v42, %v783_v36 }
  0x8b   :  { %v94_v44 = vpop.permute.xlu1 %93  ;;  %v148_v45 = vrot.slane %v540_v41, 4  ;;  %v144_v60 = vrot.slane %v143_v52, 2 }
  0x8c   :  { %vm112_vm2 = vcmp.eq.s32.totalorder %v94_v44, 1 }
  0x8d   :  { %vm120_vm3 = vmand %vm72_vm1, %vm112_vm2  ;;  %v57_v48 = vpop.permute.xlu0 %56  ;;  %v149_v51 = vadd.f32 %v540_v41, %v148_v45  ;;  %v145_v7 = vadd.f32 %v144_v60, %v143_v52 }
  0x8e   :  { %v541_v47 = vsel %vm120_vm3, 1.0, %v650_v6  ;;  %vm73_vm4 = vcmp.eq.s32.totalorder %v57_v48, %v783_v36 }
  0x8f   :  { %v154_v49 = vrot.slane %v541_v47, 4  ;;  %v97_v50 = vpop.permute.xlu1 %96  ;;  %v150_v58 = vrot.slane %v149_v51, 2  ;;  %v146_v18 = vrot.slane %v145_v7, 1 }
  0x90   :  { %vm113_vm5 = vcmp.eq.s32.totalorder %v97_v50, 1 }
  0x91   :  { %vm121_vm6 = vmand %vm73_vm4, %vm113_vm5  ;;  %v155_v53 = vadd.f32 %v541_v47, %v154_v49  ;;  %v60_v55 = vpop.permute.xlu0 %59  ;;  %v151_v4 = vadd.f32 %v150_v58, %v149_v51  ;;  %v147_v29 = vadd.f32 %v146_v18, %v145_v7  ;;  %vm231_vm4 = vcmask 1041409  }
  0x92   :  { %v542_v54 = vsel %vm121_vm6, 1.0, %v650_v6  ;;  %vm74_vm7 = vcmp.eq.s32.totalorder %v60_v55, %v783_v36  ;;  %vm233_vm5 = vcmask 1042434   ;;  %vm235_vm6 = vcmask 1043459  }
  0x93   :  { %v160_v56 = vrot.slane %v542_v54, 4  ;;  %v100_v57 = vpop.permute.xlu1 %99  ;;  %v156_v61 = vrot.slane %v155_v53, 2  ;;  %v152_v15 = vrot.slane %v151_v4, 1  ;;  %v191_v43 = vpack.c.bf16 %v147_v29, %v147_v29 }
  0x94   :  { %vm114_vm8 = vcmp.eq.s32.totalorder %v100_v57, 1 }
  0x95   :  { %v161_v59 = vadd.f32 %v542_v54, %v160_v56  ;;  %vm122_vm9 = vmand %vm74_vm7, %vm114_vm8  ;;  %v63_v63 = vpop.permute.xlu0 %62  ;;  %v157_v8 = vadd.f32 %v156_v61, %v155_v53  ;;  %v153_v26 = vadd.f32 %v152_v15, %v151_v4  ;;  %vm239_vm7 = vcmask 1045509  }
  0x96   :  { %v543_v62 = vsel %vm122_vm9, 1.0, %v650_v6  ;;  %vm75_vm11 = vcmp.eq.s32.totalorder %v63_v63, %v783_v36  ;;  %v223_v58 = vunpack.c.l.b16 %v191_v43  ;;  %vm237_vm8 = vcmask 1044484  }
  0x97   :  { %v162_v0 = vrot.slane %v161_v59, 2  ;;  %v166_v1 = vrot.slane %v543_v62, 4  ;;  %v103_v2 = vpop.permute.xlu1 %102  ;;  %v158_v3 = vrot.slane %v157_v8, 1  ;;  %v192_v40 = vpack.c.bf16 %v153_v26, %v153_v26 }
  0x98   :  { %vm115_vm12 = vcmp.eq.s32.totalorder %v103_v2, 1  ;;  %vm241_vm9 = vcmask 1046534  }
  0x99   :  { %v167_v5 = vadd.f32 %v543_v62, %v166_v1  ;;  %vm123_vm13 = vmand %vm75_vm11, %vm115_vm12  ;;  %v66_v10 = vpop.permute.xlu0 %65  ;;  %v163_v11 = vadd.f32 %v162_v0, %v161_v59  ;;  %v159_v30 = vadd.f32 %v158_v3, %v157_v8  ;;  %v224_v54 = vunpack.c.l.b16 %v192_v40 }
  0x9a   :  { %v544_v9 = vsel %vm123_vm13, 1.0, %v650_v6  ;;  %vm76_vm14 = vcmp.eq.s32.totalorder %v66_v10, %v783_v36  ;;  %vm243_vm11 = vcmask 1047559  }
  0x9b   :  { %v168_v12 = vrot.slane %v167_v5, 2  ;;  %v172_v13 = vrot.slane %v544_v9, 4  ;;  %v106_v14 = vpop.permute.xlu1 %105  ;;  %v164_v20 = vrot.slane %v163_v11, 1  ;;  %v193_v44 = vpack.c.bf16 %v159_v30, %v159_v30 }
  0x9c   :  { %vm116_vm15 = vcmp.eq.s32.totalorder %v106_v14, 1  ;;  %v232_v8 = vsel %vm231_vm4, %v224_v54, %v223_v58 }
  0x9d   :  { %v169_v16 = vadd.f32 %v168_v12, %v167_v5  ;;  %v173_v17 = vadd.f32 %v544_v9, %v172_v13  ;;  %vm124_vm0 = vmand %vm76_vm14, %vm116_vm15  ;;  %v69_v21 = vpop.permute.xlu0 %68  ;;  %v165_v33 = vadd.f32 %v164_v20, %v163_v11  ;;  %v225_v59 = vunpack.c.l.b16 %v193_v44 }
  0x9e   :  { %v545_v19 = vsel %vm124_vm0, 1.0, %v650_v6  ;;  %vm77_vm1 = vcmp.eq.s32.totalorder %v69_v21, %v783_v36 }
  0x9f   :  { %v174_v22 = vrot.slane %v173_v17, 2  ;;  %v178_v23 = vrot.slane %v545_v19, 4  ;;  %v109_v24 = vpop.permute.xlu1 %108  ;;  %v170_v25 = vrot.slane %v169_v16, 1  ;;  %v194_v47 = vpack.c.bf16 %v165_v33, %v165_v33 }
  0xa0   :  { %vm117_vm2 = vcmp.eq.s32.totalorder %v109_v24, 1  ;;  %v234_v10 = vsel %vm233_vm5, %v225_v59, %v232_v8  ;;  %v190_v24 = vld [vmem:[#allocation2] sm:$0xff] }
  0xa1   :  { %v175_v27 = vadd.f32 %v174_v22, %v173_v17  ;;  %v179_v28 = vadd.f32 %v545_v19, %v178_v23  ;;  %vm125_vm3 = vmand %vm77_vm1, %vm117_vm2  ;;  %v418_v32 = vpop.permute.xlu0 %417  ;;  %v171_v39 = vadd.f32 %v170_v25, %v169_v16  ;;  %v226_v61 = vunpack.c.l.b16 %v194_v47  ;;  %v621_v22 = vld [vmem:[%s839_s2] sm:$0xff]   ;;  %v622_v23 = vld [vmem:[%s839_s2 + $0x8] sm:$0xff]  }
  0xa2   :  { %v546_v31 = vsel %vm125_vm3, 1.0, %v650_v6  ;;  %600 = vmatpush3.bf16.msra.mxu1 %v621_v22 }
  0xa3   :  { %v176_v34 = vrot.slane %v175_v27, 1  ;;  %v180_v35 = vrot.slane %v179_v28, 2  ;;  %v184_v37 = vrot.slane %v546_v31, 4  ;;  %v422_v38 = vpop.permute.xlu1 %421  ;;  %v195_v52 = vpack.c.bf16 %v171_v39, %v171_v39  ;;  %601 = vmatprep.subr.bf16.mxu1 %v650_v6  ;;  %v563_v6 = vld [vmem:[%s840_s3] ss:$0 sm:$0xff] }
  0xa4   :  { %v447_v45 = vsel %vm231_vm4, %v422_v38, %v418_v32  ;;  %v236_v13 = vsel %vm235_vm6, %v226_v61, %v234_v10 }
  0xa5   :  { %v177_v36 = vadd.f32 %v176_v34, %v175_v27  ;;  %v181_v41 = vadd.f32 %v180_v35, %v179_v28  ;;  %v185_v42 = vadd.f32 %v546_v31, %v184_v37  ;;  %v426_v46 = vpop.permute.xlu0 %425  ;;  %v227_v2 = vunpack.c.l.b16 %v195_v52 }
  0xa6   :  { %v448_v50 = vsel %vm233_vm5, %v426_v46, %v447_v45  ;;  %602 = vmatpush3.bf16.msra.mxu1 %v622_v23 }
  0xa7   :  { %v182_v48 = vrot.slane %v181_v41, 1  ;;  %v186_v49 = vrot.slane %v185_v42, 2  ;;  %v430_v51 = vpop.permute.xlu1 %429  ;;  %v196_v55 = vpack.c.bf16 %v177_v36, %v177_v36  ;;  %v238_v16 = vsel %vm237_vm8, %v227_v2, %v236_v13 }
  0xa8   :  { %v449_v53 = vsel %vm235_vm6, %v430_v51, %v448_v50 }
  0xa9   :  { %v183_v56 = vadd.f32 %v182_v48, %v181_v41  ;;  %v187_v57 = vadd.f32 %v186_v49, %v185_v42  ;;  %v434_v60 = vpop.permute.xlu0 %433  ;;  %v228_v5 = vunpack.c.l.b16 %v196_v55 }
  0xaa   :  { %v450_v0 = vsel %vm237_vm8, %v434_v60, %v449_v53 }
  0xab   :  { %v197_v62 = vpack.c.bf16 %v183_v56, %v183_v56  ;;  %v188_v63 = vrot.slane %v187_v57, 1  ;;  %v438_v1 = vpop.permute.xlu1 %437  ;;  %v240_v3 = vsel %vm239_vm7, %v228_v5, %v238_v16 }
  0xac   :  { %v451_v4 = vsel %vm239_vm7, %v438_v1, %v450_v0 }
  0xad   :  { %v189_v7 = vadd.f32 %v188_v63, %v187_v57  ;;  %v229_v9 = vunpack.c.l.b16 %v197_v62  ;;  %v442_v11 = vpop.permute.xlu0 %441 }
  0xae   :  { %v452_v14 = vsel %vm241_vm9, %v442_v11, %v451_v4 }
  0xaf   :  { %v198_v12 = vpack.c.bf16 %v189_v7, %v189_v7  ;;  %v446_v15 = vpop.permute.xlu1 %445  ;;  %v242_v19 = vsel %vm241_vm9, %v229_v9, %v240_v3 }
  0xb0   :  { %v453_v17 = vsel %vm243_vm11, %v446_v15, %v452_v14 }
  0xb1   :  { %v230_v18 = vunpack.c.l.b16 %v198_v12  ;;  %623 = vrcp.f32 %v453_v17 }
  0xb3   :  { %v244_v21 = vsel %vm243_vm11, %v230_v18, %v242_v19 }
  0xb4   :  { %v245_v20 = vpack.c.b16 %v244_v21, %v244_v21 }
  0xb6   :  { %596 = vmatmul.mubr.bf16.vlgmr.msra.gmra.mrb[0].mxu0 %v245_v20 }
  0xbb   :  { %v624_v30 = vpop.eup %623 }
 0x189   :  { %v329_v25 = vpop.f32.mrb[0].mxu0 }
 0x18a   :  { %v335_v26 = vadd.f32 %v329_v25, %v190_v24  ;;  %v597_v27 = vpop.f32.mrb[1].mxu0 }
 0x18b   :  { %v332_v28 = vpop.f32.mrb[2].mxu0 }
 0x18c   :  { %337 = vst.msk [vmem:[#allocation2] sm:$0xff] %vm23_vm10, %v335_v26  ;;  %v598_v29 = vpop.f32.mrb[3].mxu0 }
 0x193   :  { %v406_v31 = vld [vmem:[#allocation2] sm:$0xff] }
 0x194   :  { %v456_v32 = vmul.f32 %v624_v30, %v406_v31 }
 0x196   :  { %v457_v33 = vpack.c.bf16 %v456_v32, %v456_v32 }
 0x198   :  { %604 = vmatmul.mubr.msk.bf16.vlgmr.msra.gmra.mrb[0].mxu1 %vm23_vm10, %v457_v33 }
 0x26b   :  { %v518_v34 = vpop.f32.mrb[0].mxu1 }
 0x26c   :  { %v519_v35 = vadd.f32 %v563_v6, %v518_v34  ;;  %v605_v37 = vpop.f32.mrb[1].mxu1 }
 0x26d   :  { %v521_v38 = vpop.f32.mrb[2].mxu1 }
 0x26e   :  { %524 = vst [vmem:[#allocation3] sm:$0xff] %v519_v35  ;;  %v606_v39 = vpop.f32.mrb[3].mxu1 }
 0x26f   :  { %636 = shalt.err (!%p633_p4)
}
 0x270   :  { %s637_s3 = scalar_lea.hbm %s841_s4, 128 }
 0x271   :  { %p638_p5 = scmp.ne.s32.totalorder %s841_s4, %s637_s3  ;;  %p641_p6 = scmp.lt.u32.totalorder %s637_s3, %s841_s4 }
 0x273   :  { %p643_p7 = pnand %p641_p6, %p638_p5 }
 0x275   :  { %646 = shalt.err (!%p643_p7)
}
 0x276   :  { %534 = dma.vmem_to_hbm [thread:$0]  %s532_s25, 128, %s841_s4, [#allocation4]  }
 0x277   :  { %647 = dma.done.wait [#allocation4], 128  }
 0x278   :  { %648 = vsyncadd [#allocation4], 4294967168 }
 0x279   :  { %538 = vsyncpa [#allocation4], 1 }

</bundles_post_ra>
